<compile_context>
chip_gen: v7x
topology: tpu7x:2x2x1
jax: 0.10.0
libtpu: 0.0.40
codegen_flags: <defaults>
</compile_context>

<pallas_src>
import functools

import jax
import jax.numpy as jnp
from jax import lax
from jax.experimental import pallas as pl
from jax.experimental.pallas import tpu as pltpu


def _round_up(x, m):
    return ((x + m - 1) // m) * m


def _padded_tile_bytes(rows, cols, itemsize):
    """Physical VMEM footprint of a 2-D tile (8-sublane / 128-lane padded)."""
    return _round_up(max(rows, 1), 8) * _round_up(max(cols, 1), 128) * itemsize


def _tpu_defaults():
    """(default block_m, min grid steps when multi-step, VMEM byte cap)."""
    kind = ""
    try:
        kind = jax.devices()[0].device_kind.lower()
    except Exception:  # pragma: no cover - CPU / interpret fallbacks
        pass
    if "v7" in kind:
        # 2 TensorCores share the grid; 64 MiB physical VMEM per TC.
        return 8192, 8, 48 * 1024 * 1024
    if "v6" in kind:
        return 4096, 4, 100 * 1024 * 1024
    if "v5" in kind:
        return 2048, 4, 100 * 1024 * 1024
    return 4096, 4, 48 * 1024 * 1024


def one_layer_net_kernel(x_ref, w_ref, b_ref, out_ref, *, lane_dense):
    """Fused Linear -> tanh -> log_softmax(dim=1) on one batch tile.

    x_ref   : (TM, D_in)  VMEM  batch tile
    w_ref   : (H, D_in)   VMEM  native PyTorch layout, grid-invariant
    b_ref   : (H, 1) if lane_dense else (1, H)   VMEM, grid-invariant
    out_ref : (TM, H)     VMEM
    """
    x = x_ref[...]
    w = w_ref[...]
    b = b_ref[...].astype(jnp.float32)

    if lane_dense:
        # Contract over D_in -> (H, TM): batch tile on the 128-lane axis, H on
        # sublanes, so the transcendental/elementwise work below runs on fully
        # dense vregs.  MXU accumulates in f32; no operand casts.
        z = lax.dot_general(
            w, x,
            dimension_numbers=(((1,), (1,)), ((), ())),
            preferred_element_type=jnp.float32,
        ) + b                                       # b: (H, 1), broadcast on lanes

        logits = jnp.tanh(z)                        # EUP, dense lanes

        # LogSoftmax over H (axis=0 here).  tanh bounds logits to [-1, 1], so
        # exp() is in [0.37, 2.72] and the H=16 sum cannot overflow: the usual
        # max-subtraction is unnecessary.
        lse = jnp.log(jnp.sum(jnp.exp(logits), axis=0, keepdims=True))
        out = logits - lse                          # (H, TM)

        # Single XLU transpose back to (TM, H) for the store (XLU has slack).
        out_ref[...] = jnp.transpose(out, (1, 0)).astype(out_ref.dtype)
    else:
        # Small-tile path (demo-sized batches): plain (TM, H) layout.
        z = lax.dot_general(
            x, w,
            dimension_numbers=(((1,), (1,)), ((), ())),
            preferred_element_type=jnp.float32,
        ) + b                                       # b: (1, H)
        logits = jnp.tanh(z)
        # Same tanh-bounded invariant: no max-subtraction needed.
        lse = jnp.log(jnp.sum(jnp.exp(logits), axis=1, keepdims=True))
        out_ref[...] = (logits - lse).astype(out_ref.dtype)


def one_layer_net(x, w, b, *, block_m=None, out_dtype=None):
    """Forward pass of OneLayerNet.

    x : (N, D_in)   (f32 or bf16 -- consumed in its HBM dtype, no wrapper cast)
    w : (H, D_in)   native PyTorch nn.Linear weight layout
    b : (H,)
    returns (N, H) log-probabilities in `out_dtype` (default: x.dtype).
    """
    N, D_in = x.shape
    H, D_in_w = w.shape
    assert D_in == D_in_w, "weight / input feature mismatch"
    out_dtype = x.dtype if out_dtype is None else out_dtype

    default_bm, min_steps, vmem_cap = _tpu_defaults()
    block_m = default_bm if block_m is None else _round_up(block_m, 8)

    x_item = jnp.dtype(x.dtype).itemsize
    o_item = jnp.dtype(out_dtype).itemsize

    # ---- batch tile selection ----------------------------------------------
    tm = min(block_m, _round_up(N, 8))
    if N > tm and pl.cdiv(N, tm) < min_steps:
        # Multi-step grid but too few steps for megacore sharding / pipeline
        # overlap: shrink the tile (but keep per-step bytes large).
        tm = max(1024, _round_up(pl.cdiv(N, min_steps), 128))

    def vmem_estimate(tm_):
        f32 = 4
        # Double-buffered x / out tiles, physical (padded) footprint.
        tiles = (2 * _padded_tile_bytes(tm_, D_in, x_item)
                 + 2 * _padded_tile_bytes(tm_, H, o_item))
        resident = (_padded_tile_bytes(H, D_in, x_item)
                    + _padded_tile_bytes(H, 1, f32))
        # In-kernel temporaries: (H, TM) f32 logits + (TM, H) transposed result.
        scratch = (_padded_tile_bytes(H, tm_, f32)
                   + _padded_tile_bytes(tm_, H, f32))
        return tiles + resident + scratch

    # Shrink the tile if the padded footprint (with 2x headroom) busts VMEM.
    while tm > 256 and 2 * vmem_estimate(tm) > vmem_cap:
        tm = _round_up(tm // 2, 8)

    lane_dense = tm >= 128

    n_padded = pl.cdiv(N, tm) * tm
    if n_padded != N:
        # Zero rows -> tanh(b) -> valid (discarded) log_softmax rows; no NaNs.
        x = jnp.pad(x, ((0, n_padded - N), (0, 0)))
    grid = (n_padded // tm,)

    vmem_limit = min(vmem_cap, max(2 * vmem_estimate(tm), 8 * 1024 * 1024))

    cost = pl.CostEstimate(
        flops=2 * n_padded * D_in * H,
        transcendentals=2 * n_padded * H + n_padded,    # tanh + exp (+ log/row)
        bytes_accessed=(n_padded * D_in + H * D_in + H) * x_item
                       + n_padded * H * o_item,
    )

    b2 = b.reshape(H, 1) if lane_dense else b.reshape(1, H)

    kernel = functools.partial(one_layer_net_kernel, lane_dense=lane_dense)

    out = pl.pallas_call(
        kernel,
        out_shape=jax.ShapeDtypeStruct((n_padded, H), out_dtype),
        grid_spec=pl.GridSpec(
            grid=grid,
            in_specs=[
                pl.BlockSpec((tm, D_in), lambda i: (i, 0)),     # x tile walks batch
                pl.BlockSpec((H, D_in), lambda i: (0, 0)),      # W VMEM-resident
                pl.BlockSpec(b2.shape, lambda i: (0, 0)),       # bias resident
            ],
            out_specs=pl.BlockSpec((tm, H), lambda i: (i, 0)),
        ),
        compiler_params=pltpu.CompilerParams(
            dimension_semantics=("parallel",),   # megacore-shardable batch axis
            vmem_limit_bytes=vmem_limit,
        ),
        cost_estimate=cost,
    )(x, w, b2)

    if n_padded != N:
        out = out[:N]
    return out


if __name__ == "__main__":
    # Small shapes consistent with the module: D_in=32, H=16, batch N=8.
    N, D_in, H = 8, 32, 16

    key = jax.random.PRNGKey(0)
    kx, kw, kb = jax.random.split(key, 3)

    # PyTorch nn.Linear default init: U(-1/sqrt(D_in), 1/sqrt(D_in)).
    bound = 1.0 / jnp.sqrt(jnp.float32(D_in))
    w = jax.random.uniform(kw, (H, D_in), jnp.float32, -bound, bound)
    b = jax.random.uniform(kb, (H,), jnp.float32, -bound, bound)
    x = jax.random.normal(kx, (N, D_in), jnp.float32)

    out = one_layer_net(x, w, b)
    out = jax.block_until_ready(out)

    # Sanity check against a pure-JAX reference.
    ref = jax.nn.log_softmax(jnp.tanh(x @ w.T + b), axis=1)
    assert out.shape == (N, H)
    assert jnp.allclose(out, ref, atol=1e-5, rtol=1e-5), "mismatch vs reference"

    print("KERNEL_OK")
</pallas_src>

<mosaic_0001>
module attributes {stable_mosaic.version = 11 : i64} {
  func.func @one_layer_net_kernel(%arg0: i32, %arg1: memref<8x32xf32, #tpu.memory_space<vmem>>, %arg2: memref<16x32xf32, #tpu.memory_space<vmem>>, %arg3: memref<1x16xf32, #tpu.memory_space<vmem>>, %arg4: memref<8x16xf32, #tpu.memory_space<vmem>>) attributes {dimension_semantics = [#tpu.dimension_semantics<parallel>], iteration_bounds = array<i64: 1>, scalar_prefetch = 0 : i64, scratch_operands = 0 : i64, tpu.core_type = #tpu.core_type<tc>, window_params = [{transform_indices = @transform_0, window_bounds = array<i64: 8, 32>}, {pipeline_mode = #tpu.pipeline_mode<synchronous>, transform_indices = @transform_1, window_bounds = array<i64: 16, 32>}, {pipeline_mode = #tpu.pipeline_mode<synchronous>, transform_indices = @transform_2, window_bounds = array<i64: 1, 16>}, {transform_indices = @transform_3, window_bounds = array<i64: 8, 16>}]} {
    %c0 = arith.constant 0 : index
    %c0_0 = arith.constant 0 : index
    %0 = vector.load %arg1[%c0, %c0_0] : memref<8x32xf32, #tpu.memory_space<vmem>>, vector<8x32xf32>
    %c0_1 = arith.constant 0 : index
    %c0_2 = arith.constant 0 : index
    %1 = vector.load %arg2[%c0_1, %c0_2] : memref<16x32xf32, #tpu.memory_space<vmem>>, vector<16x32xf32>
    %c0_3 = arith.constant 0 : index
    %c0_4 = arith.constant 0 : index
    %2 = vector.load %arg3[%c0_3, %c0_4] : memref<1x16xf32, #tpu.memory_space<vmem>>, vector<1x16xf32>
    %cst = arith.constant dense<0.000000e+00> : vector<8x16xf32>
    %3 = tpu.matmul %0, %1, %cst {dimension_numbers = #tpu.dot_dimension_numbers<[1], [1], [0], [0], [0, 0, 1, 0], [], []>} : vector<8x32xf32>, vector<16x32xf32>, vector<8x16xf32> -> vector<8x16xf32>
    %4 = vector.broadcast %2 : vector<1x16xf32> to vector<8x16xf32>
    %5 = arith.addf %3, %4 : vector<8x16xf32>
    %6 = math.tanh %5 : vector<8x16xf32>
    %7 = math.exp %6 : vector<8x16xf32>
    %cst_5 = arith.constant dense<0.000000e+00> : vector<8xf32>
    %8 = vector.multi_reduction <add>, %7, %cst_5 [1] : vector<8x16xf32> to vector<8xf32>
    %9 = vector.shape_cast %8 : vector<8xf32> to vector<8x1xf32>
    %10 = math.log %9 : vector<8x1xf32>
    %11 = vector.broadcast %10 : vector<8x1xf32> to vector<8x16xf32>
    %12 = arith.subf %6, %11 : vector<8x16xf32>
    %c0_6 = arith.constant 0 : index
    %c0_7 = arith.constant 0 : index
    %13 = vector.load %arg4[%c0_6, %c0_7] : memref<8x16xf32, #tpu.memory_space<vmem>>, vector<8x16xf32>
    tpu.vector_store %arg4[%c0_6, %c0_7], %12 {strides = array<i32>} : memref<8x16xf32, #tpu.memory_space<vmem>>, vector<8x16xf32>,
    return
  }
  func.func @transform_0(%arg0: i32) -> (i32, i32) {
    %c0_i32 = arith.constant 0 : i32
    %c0_i32_0 = arith.constant 0 : i32
    return %arg0, %c0_i32 : i32, i32
  }
  func.func @transform_1(%arg0: i32) -> (i32, i32) {
    %c0_i32 = arith.constant 0 : i32
    %c0_i32_0 = arith.constant 0 : i32
    %c0_i32_1 = arith.constant 0 : i32
    return %c0_i32, %c0_i32_0 : i32, i32
  }
  func.func @transform_2(%arg0: i32) -> (i32, i32) {
    %c0_i32 = arith.constant 0 : i32
    %c0_i32_0 = arith.constant 0 : i32
    %c0_i32_1 = arith.constant 0 : i32
    return %c0_i32, %c0_i32_0 : i32, i32
  }
  func.func @transform_3(%arg0: i32) -> (i32, i32) {
    %c0_i32 = arith.constant 0 : i32
    %c0_i32_0 = arith.constant 0 : i32
    return %arg0, %c0_i32 : i32, i32
  }
}

</mosaic_0001>

<bundles_post_ra>
// kernel: tpu_custom_call.1
= control target key start
LH: loop header
LB: loop body
LE: loop exit
PB: predicated region body
PF: predicated region fallthrough
CT: control target
= control target key end

     0   :  { %8 = vsyncpa [#allocation3], 0  ;;  %s336_s0 = inlined_call_operand.hbm [shape: f32[8,32], index: 0, kind: input, shape index: {}]   ;;  %s337_s1 = inlined_call_operand.hbm [shape: f32[16,32], index: 1, kind: input, shape index: {}]   ;;  %s338_s2 = inlined_call_operand.vmem [shape: f32[1,16], index: 2, kind: input, shape index: {}]   ;;  %s339_s3 = inlined_call_operand.hbm [shape: f32[8,16], index: 3, kind: output, shape index: {}]  }
   0x1   :  { %9 = vsyncpa [#allocation6], 0 }
   0x2   :  { %10 = vsyncpa [#allocation4], 0  ;;  %s262_s12 = smov [#allocation2]   ;;  %s263_s14 = smov [#allocation5]  }
   0x3   :  { %s17_s13 = sshll.u32 %s262_s12, 4  ;;  %s26_s15 = sshll.u32 %s263_s14, 4  ;;  %s18_s13 = int_to_ptr.vmem [resolvable:$true] %s17_s13  ;;  %s290_s15 = int_to_ptr.vmem [resolvable:$true] %s26_s15 }
   0x4   :  { %s190_s18 = scalar_lea.hbm %s336_s0, 128 }
   0x5   :  { %p191_p0 = scmp.ne.s32.totalorder %s336_s0, %s190_s18  ;;  %p194_p1 = scmp.lt.u32.totalorder %s190_s18, %s336_s0 }
   0x7   :  { %p196_p2 = pnand %p194_p1, %p191_p0 }
   0x9   :  { %199 = shalt.err (!%p196_p2)
}
   0xa   :  { %s200_s23 = scalar_lea.vmem %s18_s13, 128  ;;  %p205_p4 = scmp.lt.s32.totalorder %s18_s13, %s18_s13 }
   0xb   :  { %p201_p3 = scmp.ne.s32.totalorder %s18_s13, %s200_s23  ;;  %p206_p5 = scmp.lt.s32.totalorder %s200_s23, %s200_s23 }
   0xd   :  { %p207_p6 = por %p206_p5, %p205_p4 }
   0xf   :  { %p208_p7 = pnand %p207_p6, %p201_p3 }
  0x11   :  { %211 = shalt.err (!%p208_p7)
}
  0x12   :  { %20 = dma.hbm_to_vmem [thread:$0]  %s336_s0, 128, %s18_s13, [#allocation3]  }
  0x13   :  { %s212_s28 = scalar_lea.hbm %s337_s1, 256 }
  0x14   :  { %p213_p8 = scmp.ne.s32.totalorder %s337_s1, %s212_s28  ;;  %p216_p9 = scmp.lt.u32.totalorder %s212_s28, %s337_s1 }
  0x16   :  { %p218_p10 = pnand %p216_p9, %p213_p8 }
  0x18   :  { %221 = shalt.err (!%p218_p10)
}
  0x19   :  { %s222_s6 = scalar_lea.vmem %s290_s15, 256  ;;  %p227_p12 = scmp.lt.s32.totalorder %s290_s15, %s290_s15 }
  0x1a   :  { %p223_p11 = scmp.ne.s32.totalorder %s290_s15, %s222_s6  ;;  %p228_p13 = scmp.lt.s32.totalorder %s222_s6, %s222_s6 }
  0x1c   :  { %p229_p0 = por %p228_p13, %p227_p12 }
  0x1e   :  { %p230_p1 = pnand %p229_p0, %p223_p11 }
  0x20   :  { %233 = shalt.err (!%p230_p1)
}
  0x21   :  { %s264_s0 = smov 128   ;;  %s265_s7 = smov 8  }
  0x22   :  { %32 = dma.hbm_to_vmem [thread:$0]  %s337_s1, 256, %s290_s15, [#allocation6], %s264_s0, %s264_s0, %s265_s7  }
  0x23   :  { %256 = dma.done.wait [#allocation3], 128  }
  0x24   :  { %257 = vsyncadd [#allocation3], 4294967168 }
  0x25   :  { %258 = dma.done.wait [#allocation6], 256  }
  0x26   :  { %259 = vsyncadd [#allocation6], 4294967040  ;;  %v266_v0 = vmov 0.0|0.0   ;;  %vm267_vm0 = vmmov 0   ;;  %v268_v1 = vmov 0.0   ;;  %vm51_vm1 = vcmask 261120  }
  0x27   :  { %172 = vmatprep.subr.bf16.mxu0 %v266_v0  ;;  %169 = vmatprep.mubr.msk.f32.mxu0 %vm267_vm0, %v268_v1  ;;  %v42_v2 = vld [vmem:[#allocation5] sm:$0xff]  ;;  %v43_v3 = vld [vmem:[#allocation5 + $0x8] sm:$0xff]  ;;  %vm174_vm2 = vmpackc.low %vm51_vm1, %vm51_vm1  ;;  %vm134_vm3 = vcmask 130048   ;;  %s269_s1 = smov [#allocation7]  }
  0x28   :  { %v173_v4 = vpack.c.bf16 %v43_v3, %v42_v2  ;;  %v41_v5 = vld [vmem:[#allocation2] sm:$0xff]  ;;  %s148_s12 = sshll.u32 %s269_s1, 4  ;;  %s149_s12 = int_to_ptr.vmem [resolvable:$true] %s148_s12 }
  0x29   :  { %v158_v6 = vld [vmem:[%s338_s2] ss:$0 sm:$0xff]  ;;  %s234_s2 = scalar_lea.vmem %s149_s12, 128  ;;  %p239_p3 = scmp.lt.s32.totalorder %s149_s12, %s149_s12 }
  0x2a   :  { %175 = vmatpush3.bf16.xpose.msk.msra.mxu0 %vm174_vm2, %v173_v4  ;;  %p235_p2 = scmp.ne.s32.totalorder %s149_s12, %s234_s2  ;;  %p240_p4 = scmp.lt.s32.totalorder %s234_s2, %s234_s2 }
  0x2c   :  { %p241_p5 = por %p240_p4, %p239_p3 }
  0x2e   :  { %p242_p6 = pnand %p241_p5, %p235_p2 }
  0x31   :  { %170 = vmatmul.mubr.msk.f32.vlgmr.msra.gmra.mrb[0].mxu0 %vm51_vm1, %v41_v5 }
 0x104   :  { %v127_v7 = vpop.f32.mrb[0].mxu0 }
 0x105   :  { %v128_v8 = vadd.f32 %v158_v6, %v127_v7  ;;  %v171_v9 = vpop.f32.mrb[1].mxu0 }
 0x107   :  { %184 = vtanh.f32 %v128_v8 }
 0x111   :  { %v185_v10 = vpop.eup %184 }
 0x112   :  { %v132_v11 = vmul.f32 1.442695, %v185_v10 }
 0x114   :  { %186 = vpow2.f32 %v132_v11 }
 0x11e   :  { %v187_v12 = vpop.eup %186 }
 0x11f   :  { %v135_v13 = vsel %vm134_vm3, %v187_v12, 0.0 }
 0x120   :  { %136 = vadd.xlane.f32.xlu0 %v135_v13 }
 0x1ad   :  { %v137_v14 = vpop.xlane.xlu0 %136 }
 0x1ae   :  { %188 = vlog2.f32 %v137_v14 }
 0x1b8   :  { %v189_v15 = vpop.eup %188 }
 0x1b9   :  { %v139_v16 = vmul.f32 0.6931472, %v189_v15 }
 0x1bb   :  { %v140_v17 = vsub.f32 %v185_v10, %v139_v16 }
 0x1bd   :  { %141 = vst.msk [vmem:[#allocation7] sm:$0xff] %vm134_vm3, %v140_v17 }
 0x1be   :  { %245 = shalt.err (!%p242_p6)
}
 0x1bf   :  { %s246_s15 = scalar_lea.hbm %s339_s3, 128 }
 0x1c0   :  { %p247_p7 = scmp.ne.s32.totalorder %s339_s3, %s246_s15  ;;  %p250_p8 = scmp.lt.u32.totalorder %s246_s15, %s339_s3 }
 0x1c2   :  { %p252_p9 = pnand %p250_p8, %p247_p7 }
 0x1c4   :  { %255 = shalt.err (!%p252_p9)
}
 0x1c5   :  { %151 = dma.vmem_to_hbm [thread:$0]  %s149_s12, 128, %s339_s3, [#allocation4]  }
 0x1c6   :  { %260 = dma.done.wait [#allocation4], 128  }
 0x1c7   :  { %261 = vsyncadd [#allocation4], 4294967168 }
 0x1c8   :  { %155 = vsyncpa [#allocation3], 1 }
 0x1c9   :  { %156 = vsyncpa [#allocation6], 1 }
 0x1ca   :  { %157 = vsyncpa [#allocation4], 1 }

</bundles_post_ra>
